<compile_context>
chip_gen: v7x
topology: tpu7x:2x2x1
jax: 0.10.0
libtpu: 0.0.40
codegen_flags: <defaults>
</compile_context>

<pallas_src>
import jax
import jax.numpy as jnp
from jax.experimental import pallas as pl
from jax.experimental.pallas import tpu as pltpu


# ----------------------------------------------------------------------------
# Kernel (single fused call)
# ----------------------------------------------------------------------------
def _baseline_score_kernel(feat_ref, w_ref, cidx_ref, nidx_ref, b_ref,
                           all_ref, pair_ref):
    """Fused Baseline scorer.

    feat_ref : (N, D)  VMEM   sent_feat = cat([nlp, position], -1)
    w_ref    : (D, 2)  VMEM   col 0 = W[:D], col 1 = W[D:]
    cidx_ref : (1, M)  VMEM   int32 center index per pair entry (M = E*(K-1))
    nidx_ref : (1, M)  VMEM   int32 neighbor index per pair entry
    b_ref    : (1, 1)  SMEM   linear bias (scalar)
    all_ref  : (N, N)  VMEM   all_score
    pair_ref : (1, M)  VMEM   pair_score, lane-dense row
    """
    n = feat_ref.shape[0]
    m = cidx_ref.shape[1]
    bias = b_ref[0, 0]

    # One MXU matmul produces both partial-score columns at once.
    s12 = jnp.dot(feat_ref[...], w_ref[...],
                  preferred_element_type=jnp.float32)          # (N, 2)

    s1_col = s12[:, 0:1]                                       # (N, 1)
    s12_row = jnp.transpose(s12)                               # (2, N) tiny relayout
    s1_row = s12_row[0:1, :]                                   # (1, N)
    s2_row = s12_row[1:2, :]                                   # (1, N)

    # all_score[i, j] = s1[i] + s2[j] + b  -- pure VPU broadcast add.
    all_ref[...] = (s1_col + s2_row + bias).astype(all_ref.dtype)

    # pair_score[m] = s1[cidx[m]] + s2[nidx[m]] + b, gathered via tiny one-hot
    # matmuls so the result lands directly as a lane-dense (1, M) row.
    row_ids = jax.lax.broadcasted_iota(jnp.int32, (n, m), 0)   # (N, M)
    oh_c = jnp.where(row_ids == cidx_ref[...], 1.0, 0.0).astype(jnp.float32)
    oh_n = jnp.where(row_ids == nidx_ref[...], 1.0, 0.0).astype(jnp.float32)
    pair = (jnp.dot(s1_row, oh_c, preferred_element_type=jnp.float32)
            + jnp.dot(s2_row, oh_n, preferred_element_type=jnp.float32)
            + bias)                                            # (1, M)
    pair_ref[...] = pair.astype(pair_ref.dtype)


# ----------------------------------------------------------------------------
# Wrapper
# ----------------------------------------------------------------------------
_VMEM = pl.BlockSpec(memory_space=pltpu.MemorySpace.VMEM)
_SMEM = pl.BlockSpec(memory_space=pltpu.MemorySpace.SMEM)


def baseline_forward(cv_relation, nlp_feat, pos_feat, linear_w, linear_b):
    """Reproduces Baseline.forward.

    cv_relation : (E, K) int32 indices into the N sentences (col 0 = center)
    nlp_feat    : (N, nlp_dim) float32   -- stand-in for Bert(batch)
    pos_feat    : (N, pos_dim) float32   -- stand-in for NaiveFourPos(batch)
    linear_w    : (1, 2*(nlp_dim+pos_dim)) float32   (nn.Linear weight)
    linear_b    : (1,) float32                       (nn.Linear bias)
    """
    # sent_feat = cat([nlp, position], -1)
    sent_feat = jnp.concatenate([nlp_feat, pos_feat], axis=-1)     # (N, D)
    N, D = sent_feat.shape
    E, K = cv_relation.shape
    M = E * (K - 1)

    # Merge weight halves into a single (D, 2) RHS: col0 = W[:D], col1 = W[D:]
    w2col = jnp.transpose(linear_w.reshape(2, D))                  # (D, 2)

    # Pair indices only (int32 scalars) -- no D-wide gathers, no HBM broadcast
    # of the center rows.
    cidx = jnp.broadcast_to(cv_relation[:, 0:1], (E, K - 1)).reshape(1, M)
    nidx = cv_relation[:, 1:].reshape(1, M)

    all_score, pair_row = pl.pallas_call(
        _baseline_score_kernel,
        out_shape=(jax.ShapeDtypeStruct((N, N), jnp.float32),
                   jax.ShapeDtypeStruct((1, M), jnp.float32)),
        in_specs=[_VMEM,   # sent_feat
                  _VMEM,   # w2col
                  _VMEM,   # cidx
                  _VMEM,   # nidx
                  _SMEM],  # bias
        out_specs=(_VMEM, _VMEM),
    )(sent_feat, w2col,
      cidx.astype(jnp.int32), nidx.astype(jnp.int32),
      linear_b.reshape(1, 1).astype(jnp.float32))

    return {"pair_score": pair_row.reshape(E, K - 1),
            "all_score": all_score,
            "sent_embedding": None}


# ----------------------------------------------------------------------------
# Pure-JAX reference (sanity check)
# ----------------------------------------------------------------------------
def _reference(cv_relation, nlp_feat, pos_feat, linear_w, linear_b):
    sent_feat = jnp.concatenate([nlp_feat, pos_feat], axis=-1)
    lookup = jnp.take(sent_feat, cv_relation, axis=0)
    neighbors = lookup[:, 1:, :]
    center = jnp.broadcast_to(lookup[:, 0:1, :], neighbors.shape)
    pair_in = jnp.concatenate([center, neighbors], axis=-1)
    pair = (pair_in @ linear_w.T + linear_b)[..., 0]
    N, Df = sent_feat.shape
    a = jnp.broadcast_to(sent_feat[:, None, :], (N, N, Df))
    b = jnp.broadcast_to(sent_feat[None, :, :], (N, N, Df))
    allm = (jnp.concatenate([a, b], axis=-1) @ linear_w.T + linear_b)[..., 0]
    return pair, allm


# ----------------------------------------------------------------------------
# Main
# ----------------------------------------------------------------------------
if __name__ == "__main__":
    key = jax.random.PRNGKey(0)
    k1, k2, k3, k4, k5 = jax.random.split(key, 5)

    N = 8            # number of sentences in the "document"
    NLP_DIM = 112    # Bert feature dim (stand-in); chosen so D = 128 (lane-aligned)
    POS_DIM = 16     # NaiveFourPos feature dim (stand-in)
    D = NLP_DIM + POS_DIM
    E, K = 4, 4      # cv_relation: E edges, center + (K-1) neighbors

    nlp_feat = jax.random.normal(k1, (N, NLP_DIM), dtype=jnp.float32)
    pos_feat = jax.random.normal(k2, (N, POS_DIM), dtype=jnp.float32)
    cv_relation = jax.random.randint(k3, (E, K), 0, N, dtype=jnp.int32)

    # nn.Linear(matrix_dim * 2, 1): weight (1, 2D), bias (1,)
    bound = 1.0 / jnp.sqrt(2.0 * D)
    linear_w = jax.random.uniform(k4, (1, 2 * D), jnp.float32, -bound, bound)
    linear_b = jax.random.uniform(k5, (1,), jnp.float32, -bound, bound)

    out = baseline_forward(cv_relation, nlp_feat, pos_feat, linear_w, linear_b)
    jax.block_until_ready(out["pair_score"])
    jax.block_until_ready(out["all_score"])

    ref_pair, ref_all = _reference(cv_relation, nlp_feat, pos_feat,
                                   linear_w, linear_b)
    assert out["pair_score"].shape == (E, K - 1)
    assert out["all_score"].shape == (N, N)
    assert jnp.allclose(out["pair_score"], ref_pair, atol=1e-4, rtol=1e-4)
    assert jnp.allclose(out["all_score"], ref_all, atol=1e-4, rtol=1e-4)

    print("KERNEL_OK")
</pallas_src>

<mosaic_0001>
module attributes {stable_mosaic.version = 11 : i64} {
  func.func @_baseline_score_kernel(%arg0: memref<8x128xf32, #tpu.memory_space<vmem>>, %arg1: memref<128x2xf32, #tpu.memory_space<vmem>>, %arg2: memref<1x12xi32, #tpu.memory_space<vmem>>, %arg3: memref<1x12xi32, #tpu.memory_space<vmem>>, %arg4: memref<1x1xf32, #tpu.memory_space<smem>>, %arg5: memref<8x8xf32, #tpu.memory_space<vmem>>, %arg6: memref<1x12xf32, #tpu.memory_space<vmem>>) attributes {dimension_semantics = [], scalar_prefetch = 0 : i64, scratch_operands = 0 : i64, tpu.core_type = #tpu.core_type<tc>} {
    %c0 = arith.constant 0 : index
    %c0_0 = arith.constant 0 : index
    %0 = memref.load %arg4[%c0, %c0_0] : memref<1x1xf32, #tpu.memory_space<smem>>
    %c0_1 = arith.constant 0 : index
    %c0_2 = arith.constant 0 : index
    %1 = vector.load %arg0[%c0_1, %c0_2] : memref<8x128xf32, #tpu.memory_space<vmem>>, vector<8x128xf32>
    %c0_3 = arith.constant 0 : index
    %c0_4 = arith.constant 0 : index
    %2 = vector.load %arg1[%c0_3, %c0_4] : memref<128x2xf32, #tpu.memory_space<vmem>>, vector<128x2xf32>
    %cst = arith.constant dense<0.000000e+00> : vector<8x2xf32>
    %3 = tpu.matmul %1, %2, %cst {dimension_numbers = #tpu.dot_dimension_numbers<[1], [0], [0], [1], [0, 0, 1, 1], [], []>} : vector<8x128xf32>, vector<128x2xf32>, vector<8x2xf32> -> vector<8x2xf32>
    %4 = vector.extract_strided_slice %3 {offsets = [0, 0], sizes = [8, 1], strides = [1, 1]} : vector<8x2xf32> to vector<8x1xf32>
    %5 = tpu.transpose %3, [1, 0] : vector<8x2xf32> -> vector<2x8xf32>
    %6 = vector.extract_strided_slice %5 {offsets = [0, 0], sizes = [1, 8], strides = [1, 1]} : vector<2x8xf32> to vector<1x8xf32>
    %7 = vector.extract_strided_slice %5 {offsets = [1, 0], sizes = [1, 8], strides = [1, 1]} : vector<2x8xf32> to vector<1x8xf32>
    %8 = vector.broadcast %4 : vector<8x1xf32> to vector<8x8xf32>
    %9 = vector.broadcast %7 : vector<1x8xf32> to vector<8x8xf32>
    %10 = arith.addf %8, %9 : vector<8x8xf32>
    %11 = vector.broadcast %0 : f32 to vector<8x8xf32>
    %12 = arith.addf %10, %11 : vector<8x8xf32>
    %c0_5 = arith.constant 0 : index
    %c0_6 = arith.constant 0 : index
    %13 = vector.load %arg5[%c0_5, %c0_6] : memref<8x8xf32, #tpu.memory_space<vmem>>, vector<8x8xf32>
    tpu.vector_store %arg5[%c0_5, %c0_6], %12 {strides = array<i32>} : memref<8x8xf32, #tpu.memory_space<vmem>>, vector<8x8xf32>,
    %14 = tpu.iota {dimensions = array<i32: 0>} : vector<8x12xi32>
    %c0_7 = arith.constant 0 : index
    %c0_8 = arith.constant 0 : index
    %15 = vector.load %arg2[%c0_7, %c0_8] : memref<1x12xi32, #tpu.memory_space<vmem>>, vector<1x12xi32>
    %16 = vector.broadcast %15 : vector<1x12xi32> to vector<8x12xi32>
    %17 = arith.cmpi eq, %14, %16 : vector<8x12xi32>
    %cst_9 = arith.constant 1.000000e+00 : f32
    %cst_10 = arith.constant 0.000000e+00 : f32
    %18 = vector.broadcast %cst_9 : f32 to vector<8x12xf32>
    %19 = vector.broadcast %cst_10 : f32 to vector<8x12xf32>
    %20 = arith.select %17, %18, %19 : vector<8x12xi1>, vector<8x12xf32>
    %c0_11 = arith.constant 0 : index
    %c0_12 = arith.constant 0 : index
    %21 = vector.load %arg3[%c0_11, %c0_12] : memref<1x12xi32, #tpu.memory_space<vmem>>, vector<1x12xi32>
    %22 = vector.broadcast %21 : vector<1x12xi32> to vector<8x12xi32>
    %23 = arith.cmpi eq, %14, %22 : vector<8x12xi32>
    %cst_13 = arith.constant 1.000000e+00 : f32
    %cst_14 = arith.constant 0.000000e+00 : f32
    %24 = vector.broadcast %cst_13 : f32 to vector<8x12xf32>
    %25 = vector.broadcast %cst_14 : f32 to vector<8x12xf32>
    %26 = arith.select %23, %24, %25 : vector<8x12xi1>, vector<8x12xf32>
    %cst_15 = arith.constant dense<0.000000e+00> : vector<1x12xf32>
    %27 = tpu.matmul %6, %20, %cst_15 {dimension_numbers = #tpu.dot_dimension_numbers<[1], [0], [0], [1], [0, 0, 1, 1], [], []>} : vector<1x8xf32>, vector<8x12xf32>, vector<1x12xf32> -> vector<1x12xf32>
    %cst_16 = arith.constant dense<0.000000e+00> : vector<1x12xf32>
    %28 = tpu.matmul %7, %26, %cst_16 {dimension_numbers = #tpu.dot_dimension_numbers<[1], [0], [0], [1], [0, 0, 1, 1], [], []>} : vector<1x8xf32>, vector<8x12xf32>, vector<1x12xf32> -> vector<1x12xf32>
    %29 = arith.addf %27, %28 : vector<1x12xf32>
    %30 = vector.broadcast %0 : f32 to vector<1x12xf32>
    %31 = arith.addf %29, %30 : vector<1x12xf32>
    %c0_17 = arith.constant 0 : index
    %c0_18 = arith.constant 0 : index
    %32 = vector.load %arg6[%c0_17, %c0_18] : memref<1x12xf32, #tpu.memory_space<vmem>>, vector<1x12xf32>
    tpu.vector_store %arg6[%c0_17, %c0_18], %31 {strides = array<i32>} : memref<1x12xf32, #tpu.memory_space<vmem>>, vector<1x12xf32>,
    return
  }
}

</mosaic_0001>

<bundles_post_ra>
// kernel: tpu_custom_call.1
= control target key start
LH: loop header
LB: loop body
LE: loop exit
PB: predicated region body
PF: predicated region fallthrough
CT: control target
= control target key end

     0   :  { %13 = vsyncpa [#allocation4], 0  ;;  %v504_v3 = vmov 0.0|0.0   ;;  %vm505_vm0 = vmmov 0   ;;  %v506_v6 = vmov 0.0   ;;  %s633_s0 = inlined_call_operand.vmem [shape: f32[8,128], index: 0, kind: input, shape index: {}]   ;;  %s634_s1 = inlined_call_operand.vmem [shape: f32[128,2], index: 1, kind: input, shape index: {}]   ;;  %s635_s2 = inlined_call_operand.vmem [shape: s32[1,12], index: 2, kind: input, shape index: {}]   ;;  %s636_s3 = inlined_call_operand.vmem [shape: s32[1,12], index: 3, kind: input, shape index: {}]   ;;  %s637_s4 = inlined_call_operand.<no memory space> [shape: f32[1,1], index: 4, kind: input, shape index: {}]   ;;  %s638_s5 = inlined_call_operand.hbm [shape: f32[8,8], index: 5, kind: output, shape index: {0}]   ;;  %s639_s6 = inlined_call_operand.hbm [shape: f32[1,12], index: 6, kind: output, shape index: {1}]  }
   0x1   :  { %v27_v0 = vld [vmem:[%s634_s1] sm:$0xff]  ;;  %v28_v1 = vld [vmem:[%s634_s1 + $0x8] sm:$0xff]  ;;  %v29_v2 = vld [vmem:[%s634_s1 + $0x10] sm:$0xff]  ;;  %424 = vmatprep.subr.bf16.mxu0 %v504_v3  ;;  %411 = vmatprep.mubr.msk.f32.mxu0 %vm505_vm0, %v506_v6 }
   0x2   :  { %v425_v4 = vpack.c.bf16 %v28_v1, %v27_v0  ;;  %v30_v5 = vld [vmem:[%s634_s1 + $0x18] sm:$0xff]  ;;  %414 = vmatprep.subr.mxu1 %v506_v6  ;;  %416 = vmatprep.mubr.msk.f32.mxu1 %vm505_vm0, %v506_v6  ;;  %v31_v8 = vld [vmem:[%s634_s1 + $0x20] sm:$0xff]  ;;  %v32_v9 = vld [vmem:[%s634_s1 + $0x28] sm:$0xff] }
   0x3   :  { %v428_v7 = vpack.c.bf16 %v30_v5, %v29_v2 }
   0x4   :  { %426 = vmatpush3.bf16.msra.mxu0 %v425_v4 }
   0x5   :  { %427 = vmatprep.subr.bf16.mxu0 %v504_v3 }
   0x6   :  { %14 = vsyncpa [#allocation6], 0  ;;  %v431_v10 = vpack.c.bf16 %v32_v9, %v31_v8  ;;  %v33_v11 = vld [vmem:[%s634_s1 + $0x30] sm:$0xff]  ;;  %v34_v12 = vld [vmem:[%s634_s1 + $0x38] sm:$0xff]  ;;  %v150_v27 = vlaneseq  ;;  %v507_v32 = vmov 1.0   ;;  %v508_v33 = vmov 0  }
   0x7   :  { %v434_v13 = vpack.c.bf16 %v34_v12, %v33_v11  ;;  %v35_v14 = vld [vmem:[%s634_s1 + $0x40] sm:$0xff]  ;;  %v36_v15 = vld [vmem:[%s634_s1 + $0x48] sm:$0xff]  ;;  %v37_v17 = vld [vmem:[%s634_s1 + $0x50] sm:$0xff]  ;;  %vm157_vm2 = vcmask 64512   ;;  %v155_v40 = vstv %s637_s4 }
   0x8   :  { %429 = vmatpush3.bf16.msra.mxu0 %v428_v7  ;;  %v437_v16 = vpack.c.bf16 %v36_v15, %v35_v14  ;;  %v38_v18 = vld [vmem:[%s634_s1 + $0x58] sm:$0xff]  ;;  %v39_v20 = vld [vmem:[%s634_s1 + $0x60] sm:$0xff]  ;;  %v40_v21 = vld [vmem:[%s634_s1 + $0x68] sm:$0xff]  ;;  %v151_v29 = vshrl.u32 %v150_v27, 7 }
   0x9   :  { %430 = vmatprep.subr.bf16.mxu0 %v504_v3  ;;  %v440_v19 = vpack.c.bf16 %v38_v18, %v37_v17  ;;  %v443_v22 = vpack.c.bf16 %v40_v21, %v39_v20  ;;  %v41_v23 = vld [vmem:[%s634_s1 + $0x70] sm:$0xff]  ;;  %v42_v24 = vld [vmem:[%s634_s1 + $0x78] sm:$0xff]  ;;  %v26_v26 = vld [vmem:[%s633_s0] sm:$0xff] }
   0xa   :  { %v446_v25 = vpack.c.bf16 %v42_v24, %v41_v23  ;;  %v353_v31 = vld [vmem:[%s636_s3] ss:$0 sm:$0xff]  ;;  %v152_v37 = vsub.s32 1, %v151_v29 }
   0xb   :  { %vm173_vm1 = vcmp.eq.s32.totalorder %v151_v29, %v353_v31  ;;  %v352_v34 = vld [vmem:[%s635_s2] ss:$0 sm:$0xff]  ;;  %s509_s2 = smov [#allocation3]  }
   0xc   :  { %432 = vmatpush3.bf16.msra.mxu0 %v431_v10  ;;  %415 = vmatpush3.msk.msra.mxu1 %vm173_vm1, %v507_v32  ;;  %vm166_vm3 = vcmp.eq.s32.totalorder %v151_v29, %v352_v34  ;;  %s330_s10 = sshll.u32 %s509_s2, 4  ;;  %s331_s10 = int_to_ptr.vmem [resolvable:$true] %s330_s10 }
   0xd   :  { %433 = vmatprep.subr.bf16.mxu0 %v504_v3  ;;  %419 = vmatprep.subr.mxu1 %v506_v6  ;;  %s456_s11 = scalar_lea.vmem %s331_s10, 128  ;;  %p461_p1 = scmp.lt.s32.totalorder %s331_s10, %s331_s10 }
   0xe   :  { %p457_p0 = scmp.ne.s32.totalorder %s331_s10, %s456_s11  ;;  %p462_p2 = scmp.lt.s32.totalorder %s456_s11, %s456_s11 }
  0x10   :  { %435 = vmatpush3.bf16.msra.mxu0 %v434_v13  ;;  %p463_p3 = por %p462_p2, %p461_p1 }
  0x11   :  { %436 = vmatprep.subr.bf16.mxu0 %v504_v3 }
  0x12   :  { %p464_p4 = pnand %p463_p3, %p457_p0 }
  0x14   :  { %438 = vmatpush3.bf16.msra.mxu0 %v437_v16 }
  0x15   :  { %439 = vmatprep.subr.bf16.mxu0 %v504_v3 }
  0x18   :  { %441 = vmatpush3.bf16.msra.mxu0 %v440_v19 }
  0x19   :  { %442 = vmatprep.subr.bf16.mxu0 %v504_v3 }
  0x1c   :  { %444 = vmatpush3.bf16.msra.mxu0 %v443_v22 }
  0x1d   :  { %445 = vmatprep.subr.bf16.mxu0 %v504_v3 }
  0x20   :  { %447 = vmatpush3.bf16.msra.mxu0 %v446_v25 }
  0x23   :  { %412 = vmatmul.mubr.f32.vlgmr.msra.gmra.mrb[0].mxu0 %v26_v26 }
  0xf6   :  { %v109_v28 = vpop.f32.mrb[0].mxu0 }
  0xf7   :  { %113 = vxpose.xlu0.b32.start.end [1/1] (short) (narrow) %v109_v28, 8  ;;  %v413_v30 = vpop.f32.mrb[1].mxu0 }
 0x120   :  { %455 = vset.pattern.permute.xlu0 %v508_v33 }
 0x121   :  { %147 = vperm.xlu0 %455, %v109_v28  }
 0x177   :  { %v129_v35 = vpop.trf.xlu0 }
 0x178   :  { %v176_v36 = vrot.slane %v129_v35, 1  ;;  %v153_v38 = vrot.slane %v129_v35, %v152_v37 }
 0x17a   :  { %417 = vmatmul.mubr.msk.f32.vlgmr.msra.gmra.mrb[0].mxu1 %vm157_vm2, %v176_v36 }
 0x17b   :  { %420 = vmatpush3.msk.msra.mxu1 %vm166_vm3, %v507_v32  ;;  %421 = vmatprep.mubr.msk.f32.mxu1 %vm505_vm0, %v506_v6 }
 0x17e   :  { %422 = vmatmul.mubr.msk.f32.vlgmr.msra.gmra.mrb[2].mxu1 %vm157_vm2, %v129_v35 }
 0x1a0   :  { %v148_v39 = vpop.permute.xlu0 %147 }
 0x1a1   :  { %v154_v41 = vadd.f32 %v153_v38, %v148_v39 }
 0x1a3   :  { %v156_v42 = vadd.f32 %v155_v40, %v154_v41 }
 0x1a5   :  { %158 = vst.msk [vmem:[#allocation3] sm:$0xff] %vm157_vm2, %v156_v42 }
 0x1a6   :  { %467 = shalt.err (!%p464_p4)
}
 0x1a7   :  { %s468_s14 = scalar_lea.hbm %s638_s5, 128 }
 0x1a8   :  { %p469_p5 = scmp.ne.s32.totalorder %s638_s5, %s468_s14  ;;  %p472_p6 = scmp.lt.u32.totalorder %s468_s14, %s638_s5 }
 0x1aa   :  { %p474_p7 = pnand %p472_p6, %p469_p5 }
 0x1ac   :  { %477 = shalt.err (!%p474_p7)
}
 0x1ad   :  { %333 = dma.vmem_to_hbm [thread:$0]  %s331_s10, 128, %s638_s5, [#allocation4]   ;;  %vm322_vm4 = vcmask 90112  }
 0x1ae   :  { %s510_s20 = smov [#allocation5]  }
 0x1af   :  { %s340_s21 = sshll.u32 %s510_s20, 4  ;;  %s341_s21 = int_to_ptr.vmem [resolvable:$true] %s340_s21 }
 0x1b0   :  { %s478_s22 = scalar_lea.vmem %s341_s21, 16  ;;  %s482_s23 = scalar_lea.vmem %s341_s21, 32 }
 0x1b1   :  { %p479_p8 = scmp.ne.s32.totalorder %s341_s21, %s478_s22  ;;  %p483_p9 = scmp.lt.s32.totalorder %s341_s21, %s341_s21 }
 0x1b2   :  { %p484_p10 = scmp.lt.s32.totalorder %s482_s23, %s478_s22 }
 0x1b4   :  { %p485_p11 = por %p484_p10, %p483_p9 }
 0x1b6   :  { %p486_p12 = pnand %p485_p11, %p479_p8 }
 0x24d   :  { %v245_v43 = vpop.f32.mrb[0].mxu1 }
 0x24e   :  { %v418_v44 = vpop.f32.mrb[1].mxu1 }
 0x251   :  { %v317_v45 = vpop.f32.mrb[2].mxu1 }
 0x252   :  { %v318_v46 = vadd.f32 %v317_v45, %v245_v43  ;;  %v423_v47 = vpop.f32.mrb[3].mxu1 }
 0x254   :  { %v321_v48 = vadd.f32 %v318_v46, %v155_v40 }
 0x256   :  { %323 = vst.msk [vmem:[#allocation5] sm:$0x1] %vm322_vm4, %v321_v48 }
 0x257   :  { %489 = shalt.err (!%p486_p12)
}
 0x258   :  { %s490_s25 = scalar_lea.hbm %s639_s6, 16 }
 0x259   :  { %p491_p13 = scmp.ne.s32.totalorder %s639_s6, %s490_s25  ;;  %p494_p0 = scmp.lt.u32.totalorder %s490_s25, %s639_s6 }
 0x25b   :  { %p496_p1 = pnand %p494_p0, %p491_p13 }
 0x25d   :  { %499 = shalt.err (!%p496_p1)
}
 0x25e   :  { %343 = dma.vmem_to_hbm [thread:$0]  %s341_s21, 16, %s639_s6, [#allocation6]  }
 0x25f   :  { %500 = dma.done.wait [#allocation4], 128  }
 0x260   :  { %501 = vsyncadd [#allocation4], 4294967168 }
 0x261   :  { %502 = dma.done.wait [#allocation6], 16  }
 0x262   :  { %503 = vsyncadd [#allocation6], 4294967280 }
 0x263   :  { %350 = vsyncpa [#allocation4], 1 }
 0x264   :  { %351 = vsyncpa [#allocation6], 1 }

</bundles_post_ra>
